<compile_context>
chip_gen: v6e
topology: v6e:2x2x1
jax: 0.10.0
libtpu: 0.0.40
codegen_flags: <defaults>
</compile_context>

<pallas_src>
import jax
import jax.numpy as jnp
from jax.experimental import pallas as pl
from jax.experimental.pallas import tpu as pltpu

LANES = 128


def _fused_readout_kernel(x_ref, w_ref, b_ref, alpha_ref, oma_ref, mem0_ref,
                          out_ref, mem_sc):
    """One grid step == one timestep. mem_sc is the resident membrane state."""
    t = pl.program_id(0)

    @pl.when(t == 0)
    def _():
        mem_sc[...] = mem0_ref[...]

    # Linear layer on the MXU, f32 accumulation.  x_ref block is (1, B, K).
    d_input = jnp.dot(x_ref[0], w_ref[...],
                      preferred_element_type=jnp.float32) + b_ref[...]

    # Leaky-integrator membrane update (alpha precomputed on host).
    mem_new = mem_sc[...] * alpha_ref[...] + oma_ref[...] * d_input
    mem_sc[...] = mem_new
    out_ref[0] = mem_new


def readout_integrator_sequence(spikes, weight_t, bias, tau_m, mem0):
    """Run T fused timesteps of the readout integrator.

    Args:
      spikes:   (T, B, input_dim) float32
      weight_t: (input_dim, output_dim) float32 (transposed torch Linear weight)
      bias:     (1, output_dim) float32
      tau_m:    (1, output_dim) float32
      mem0:     (B, output_dim) float32 initial membrane state
    Returns:
      (T, B, output_dim) float32 — membrane state after each timestep
      (element [t] equals what the t-th call of `forward` would return).
    """
    T, B, input_dim = spikes.shape
    output_dim = weight_t.shape[1]

    # Lane-dense padding of the output/feature axis to a multiple of 128.
    Dp = pl.cdiv(output_dim, LANES) * LANES
    pad = Dp - output_dim

    # Hoisted out of the kernel: alpha is a parameter, constant over time.
    alpha = jnp.exp(-1.0 / tau_m)            # (1, output_dim)
    oma = 1.0 - alpha

    # Zero-pad along the feature axis: padded lanes stay identically zero
    # through the whole recurrence (0*0 + 0*(x@0 + 0) == 0).
    w_p = jnp.pad(weight_t, ((0, 0), (0, pad)))
    b_p = jnp.pad(bias, ((0, 0), (0, pad)))
    alpha_p = jnp.pad(alpha, ((0, 0), (0, pad)))
    oma_p = jnp.pad(oma, ((0, 0), (0, pad)))
    mem0_p = jnp.pad(mem0, ((0, 0), (0, pad)))

    out = pl.pallas_call(
        _fused_readout_kernel,
        out_shape=jax.ShapeDtypeStruct((T, B, Dp), jnp.float32),
        grid_spec=pltpu.PrefetchScalarGridSpec(
            num_scalar_prefetch=0,
            grid=(T,),
            in_specs=[
                # per-timestep spike block
                pl.BlockSpec((1, B, input_dim), lambda t: (t, 0, 0)),
                # parameters resident across the whole time loop
                pl.BlockSpec((input_dim, Dp), lambda t: (0, 0)),
                pl.BlockSpec((1, Dp), lambda t: (0, 0)),
                pl.BlockSpec((1, Dp), lambda t: (0, 0)),
                pl.BlockSpec((1, Dp), lambda t: (0, 0)),
                pl.BlockSpec((B, Dp), lambda t: (0, 0)),
            ],
            out_specs=pl.BlockSpec((1, B, Dp), lambda t: (t, 0, 0)),
            scratch_shapes=[pltpu.VMEM((B, Dp), jnp.float32)],
        ),
        compiler_params=pltpu.CompilerParams(
            # time axis carries mem -> sequential
            dimension_semantics=("arbitrary",)),
    )(spikes, w_p, b_p, alpha_p, oma_p, mem0_p)

    return out[:, :, :output_dim]


def readout_integrator_forward(input_spike, weight_t, bias, tau_m, mem):
    """Single-timestep forward (exact `forward` semantics) via the fused kernel."""
    out_seq = readout_integrator_sequence(input_spike[None], weight_t, bias,
                                          tau_m, mem)
    return out_seq[0]


if __name__ == "__main__":
    # Small, deterministic example consistent with the module:
    #   input_dim=64, output_dim=32, batch=8, T=8 timesteps.
    T, batch, input_dim, output_dim = 8, 8, 64, 32
    tauM, tauM_std = 20.0, 5.0

    key = jax.random.PRNGKey(0)
    k_x, k_w, k_b, k_tau = jax.random.split(key, 4)

    # nn.Linear-style init (uniform in +-1/sqrt(fan_in)), stored transposed.
    bound = 1.0 / (input_dim ** 0.5)
    weight_t = jax.random.uniform(k_w, (input_dim, output_dim), jnp.float32,
                                  minval=-bound, maxval=bound)
    bias = jax.random.uniform(k_b, (1, output_dim), jnp.float32,
                              minval=-bound, maxval=bound)
    # tau_m ~ Normal(tauM, tauM_std)
    tau_m = tauM + tauM_std * jax.random.normal(k_tau, (1, output_dim),
                                                jnp.float32)

    # Spike train and initial membrane state (set_neuron_state -> zeros).
    spikes = (jax.random.uniform(k_x, (T, batch, input_dim)) > 0.5
              ).astype(jnp.float32)
    mem0 = jnp.zeros((batch, output_dim), jnp.float32)

    out = readout_integrator_sequence(spikes, weight_t, bias, tau_m, mem0)
    out = jax.block_until_ready(out)

    # Plain-JAX reference: the same recurrence, one timestep at a time.
    alpha = jnp.exp(-1.0 / tau_m)
    mem_ref = mem0
    refs = []
    for t in range(T):
        d_ref = spikes[t] @ weight_t + bias
        mem_ref = mem_ref * alpha + (1.0 - alpha) * d_ref
        refs.append(mem_ref)
    ref = jnp.stack(refs, axis=0)
    assert jnp.allclose(out, ref, atol=1e-5, rtol=1e-5), "mismatch vs reference"

    # Also check the single-step forward path (T == 1).
    out1 = readout_integrator_forward(spikes[0], weight_t, bias, tau_m, mem0)
    out1 = jax.block_until_ready(out1)
    assert jnp.allclose(out1, ref[0], atol=1e-5, rtol=1e-5), "single-step mismatch"

    print("KERNEL_OK")
</pallas_src>

<mosaic_0001>
module attributes {stable_mosaic.version = 11 : i64} {
  func.func @_fused_readout_kernel(%arg0: i32, %arg1: memref<1x8x64xf32, #tpu.memory_space<vmem>>, %arg2: memref<64x128xf32, #tpu.memory_space<vmem>>, %arg3: memref<1x128xf32, #tpu.memory_space<vmem>>, %arg4: memref<1x128xf32, #tpu.memory_space<vmem>>, %arg5: memref<1x128xf32, #tpu.memory_space<vmem>>, %arg6: memref<8x128xf32, #tpu.memory_space<vmem>>, %arg7: memref<1x8x128xf32, #tpu.memory_space<vmem>>, %arg8: memref<8x128xf32, #tpu.memory_space<vmem>>) attributes {dimension_semantics = [#tpu.dimension_semantics<arbitrary>], iteration_bounds = array<i64: 8>, scalar_prefetch = 0 : i64, scratch_operands = 1 : i64, tpu.core_type = #tpu.core_type<tc>, window_params = [{transform_indices = @transform_0, window_bounds = array<i64: 1, 8, 64>}, {pipeline_mode = #tpu.pipeline_mode<synchronous>, transform_indices = @transform_1, window_bounds = array<i64: 64, 128>}, {pipeline_mode = #tpu.pipeline_mode<synchronous>, transform_indices = @transform_2, window_bounds = array<i64: 1, 128>}, {pipeline_mode = #tpu.pipeline_mode<synchronous>, transform_indices = @transform_3, window_bounds = array<i64: 1, 128>}, {pipeline_mode = #tpu.pipeline_mode<synchronous>, transform_indices = @transform_4, window_bounds = array<i64: 1, 128>}, {pipeline_mode = #tpu.pipeline_mode<synchronous>, transform_indices = @transform_5, window_bounds = array<i64: 8, 128>}, {transform_indices = @transform_6, window_bounds = array<i64: 1, 8, 128>}]} {
    %c0_i32 = arith.constant 0 : i32
    %0 = arith.cmpi eq, %arg0, %c0_i32 : i32
    %1 = arith.extui %0 : i1 to i32
    %c0_i32_0 = arith.constant 0 : i32
    %2 = arith.cmpi ne, %1, %c0_i32_0 : i32
    scf.if %2 {
      %c0_18 = arith.constant 0 : index
      %c0_19 = arith.constant 0 : index
      %22 = vector.load %arg6[%c0_18, %c0_19] : memref<8x128xf32, #tpu.memory_space<vmem>>, vector<8x128xf32>
      %c0_20 = arith.constant 0 : index
      %c0_21 = arith.constant 0 : index
      %23 = vector.load %arg8[%c0_20, %c0_21] : memref<8x128xf32, #tpu.memory_space<vmem>>, vector<8x128xf32>
      tpu.vector_store %arg8[%c0_20, %c0_21], %22 {strides = array<i32>} : memref<8x128xf32, #tpu.memory_space<vmem>>, vector<8x128xf32>,
    } else {
    }
    %c0 = arith.constant 0 : index
    %c0_1 = arith.constant 0 : index
    %c0_2 = arith.constant 0 : index
    %3 = vector.load %arg1[%c0, %c0_1, %c0_2] : memref<1x8x64xf32, #tpu.memory_space<vmem>>, vector<1x8x64xf32>
    %4 = vector.shape_cast %3 : vector<1x8x64xf32> to vector<8x64xf32>
    %c0_3 = arith.constant 0 : index
    %c0_4 = arith.constant 0 : index
    %5 = vector.load %arg2[%c0_3, %c0_4] : memref<64x128xf32, #tpu.memory_space<vmem>>, vector<64x128xf32>
    %cst = arith.constant dense<0.000000e+00> : vector<8x128xf32>
    %6 = tpu.matmul %4, %5, %cst {dimension_numbers = #tpu.dot_dimension_numbers<[1], [0], [0], [1], [0, 0, 1, 1], [], []>} : vector<8x64xf32>, vector<64x128xf32>, vector<8x128xf32> -> vector<8x128xf32>
    %c0_5 = arith.constant 0 : index
    %c0_6 = arith.constant 0 : index
    %7 = vector.load %arg3[%c0_5, %c0_6] : memref<1x128xf32, #tpu.memory_space<vmem>>, vector<1x128xf32>
    %8 = vector.broadcast %7 : vector<1x128xf32> to vector<8x128xf32>
    %9 = arith.addf %6, %8 : vector<8x128xf32>
    %c0_7 = arith.constant 0 : index
    %c0_8 = arith.constant 0 : index
    %10 = vector.load %arg8[%c0_7, %c0_8] : memref<8x128xf32, #tpu.memory_space<vmem>>, vector<8x128xf32>
    %c0_9 = arith.constant 0 : index
    %c0_10 = arith.constant 0 : index
    %11 = vector.load %arg4[%c0_9, %c0_10] : memref<1x128xf32, #tpu.memory_space<vmem>>, vector<1x128xf32>
    %12 = vector.broadcast %11 : vector<1x128xf32> to vector<8x128xf32>
    %13 = arith.mulf %10, %12 : vector<8x128xf32>
    %c0_11 = arith.constant 0 : index
    %c0_12 = arith.constant 0 : index
    %14 = vector.load %arg5[%c0_11, %c0_12] : memref<1x128xf32, #tpu.memory_space<vmem>>, vector<1x128xf32>
    %15 = vector.broadcast %14 : vector<1x128xf32> to vector<8x128xf32>
    %16 = arith.mulf %15, %9 : vector<8x128xf32>
    %17 = arith.addf %13, %16 : vector<8x128xf32>
    %c0_13 = arith.constant 0 : index
    %c0_14 = arith.constant 0 : index
    %18 = vector.load %arg8[%c0_13, %c0_14] : memref<8x128xf32, #tpu.memory_space<vmem>>, vector<8x128xf32>
    tpu.vector_store %arg8[%c0_13, %c0_14], %17 {strides = array<i32>} : memref<8x128xf32, #tpu.memory_space<vmem>>, vector<8x128xf32>,
    %c0_15 = arith.constant 0 : index
    %c0_16 = arith.constant 0 : index
    %c0_17 = arith.constant 0 : index
    %19 = vector.load %arg7[%c0_15, %c0_16, %c0_17] : memref<1x8x128xf32, #tpu.memory_space<vmem>>, vector<1x8x128xf32>
    %20 = vector.shape_cast %19 : vector<1x8x128xf32> to vector<8x128xf32>
    %21 = vector.shape_cast %17 : vector<8x128xf32> to vector<1x8x128xf32>
    tpu.vector_store %arg7[%c0_15, %c0_16, %c0_17], %21 {strides = array<i32>} : memref<1x8x128xf32, #tpu.memory_space<vmem>>, vector<1x8x128xf32>,
    return
  }
  func.func @transform_0(%arg0: i32) -> (i32, i32, i32) {
    %c0_i32 = arith.constant 0 : i32
    %c0_i32_0 = arith.constant 0 : i32
    %c0_i32_1 = arith.constant 0 : i32
    return %arg0, %c0_i32, %c0_i32_0 : i32, i32, i32
  }
  func.func @transform_1(%arg0: i32) -> (i32, i32) {
    %c0_i32 = arith.constant 0 : i32
    %c0_i32_0 = arith.constant 0 : i32
    %c0_i32_1 = arith.constant 0 : i32
    return %c0_i32, %c0_i32_0 : i32, i32
  }
  func.func @transform_2(%arg0: i32) -> (i32, i32) {
    %c0_i32 = arith.constant 0 : i32
    %c0_i32_0 = arith.constant 0 : i32
    %c0_i32_1 = arith.constant 0 : i32
    return %c0_i32, %c0_i32_0 : i32, i32
  }
  func.func @transform_3(%arg0: i32) -> (i32, i32) {
    %c0_i32 = arith.constant 0 : i32
    %c0_i32_0 = arith.constant 0 : i32
    %c0_i32_1 = arith.constant 0 : i32
    return %c0_i32, %c0_i32_0 : i32, i32
  }
  func.func @transform_4(%arg0: i32) -> (i32, i32) {
    %c0_i32 = arith.constant 0 : i32
    %c0_i32_0 = arith.constant 0 : i32
    %c0_i32_1 = arith.constant 0 : i32
    return %c0_i32, %c0_i32_0 : i32, i32
  }
  func.func @transform_5(%arg0: i32) -> (i32, i32) {
    %c0_i32 = arith.constant 0 : i32
    %c0_i32_0 = arith.constant 0 : i32
    %c0_i32_1 = arith.constant 0 : i32
    return %c0_i32, %c0_i32_0 : i32, i32
  }
  func.func @transform_6(%arg0: i32) -> (i32, i32, i32) {
    %c0_i32 = arith.constant 0 : i32
    %c0_i32_0 = arith.constant 0 : i32
    %c0_i32_1 = arith.constant 0 : i32
    return %arg0, %c0_i32, %c0_i32_0 : i32, i32, i32
  }
}

</mosaic_0001>

<bundles_post_ra>
// kernel: tpu_custom_call.1
= control target key start
LH: loop header
LB: loop body
LE: loop exit
PB: predicated region body
PF: predicated region fallthrough
CT: control target
= control target key end

     0   :  { %s1089_s0 = inlined_call_operand.hbm [shape: f32[8,8,64], index: 0, kind: input, shape index: {}]   ;;  %s1090_s1 = inlined_call_operand.hbm [shape: f32[64,128], index: 1, kind: input, shape index: {}]   ;;  %s1091_s2 = inlined_call_operand.vmem [shape: f32[1,128], index: 2, kind: input, shape index: {}]   ;;  %s1092_s3 = inlined_call_operand.hbm [shape: f32[1,128], index: 3, kind: input, shape index: {}]   ;;  %s1093_s4 = inlined_call_operand.hbm [shape: f32[1,128], index: 4, kind: input, shape index: {}]   ;;  %s1094_s5 = inlined_call_operand.vmem [shape: f32[8,128], index: 5, kind: input, shape index: {}]   ;;  %s1095_s6 = inlined_call_operand.hbm [shape: f32[8,8,128], index: 6, kind: output, shape index: {}]  }
   0x1   :  { %1100 = sst [smem:[#allocation16_spill]] %s1090_s1 }
   0x2   :  { %11 = vsyncpa [#allocation4], 0 }
   0x3   :  { %13 = vsyncpa [#allocation4 + $0x1], 0 }
   0x4   :  { %14 = vsyncpa [#allocation7], 0 }
   0x5   :  { %15 = vsyncpa [#allocation10], 0 }
   0x6   :  { %16 = vsyncpa [#allocation5], 0 }
   0x7   :  { %18 = vsyncpa [#allocation5 + $0x1], 0  ;;  %s892_s21 = smov 0   ;;  %s894_s22 = smov 0  }
   0x8   :  { %s896_s23 = smov 0   ;;  %s898_s24 = smov 0  }
   0x9 LB: > { %s913_s25 = sadd.s32 4294967295, %s846_s24   ;;  %s536_s26 = sadd.s32 4294967294, %s846_s24   ;;  %s846_s24 = sphi %s898_s24, %s1121_s24   ;;  %s842_s23 = sphi %s896_s23, %s1120_s23   ;;  %s838_s22 = sphi %s894_s22, %s1119_s22   ;;  %s834_s21 = sphi %s892_s21, %s1118_s21  }
   0xa   : > { %p44_p0 = scmp.ne.s32.totalorder %s838_s22, %s834_s21  ;;  %p1096_p1 = scmp.eq.s32.totalorder %s913_s25, 0 }
   0xb   : > { %p179_p3 = scmp.eq.s32.totalorder %s536_s26, 7  ;;  %p537_p5 = scmp.ge.s32.totalorder %s846_s24, 1 }
   0xc   : > { %p922_p4 = por %p1096_p1, %p44_p0  ;;  %p186_p7 = scmp.lt.s32.totalorder %s846_s24, 9 }
   0xd   : > { %p927_p6 = por %p179_p3, %p44_p0  ;;  %s848_s30 = smov [#allocation6]  }
   0xe   : > { %s1101_s27 = scalar_select %p922_p4, 1, 0 }
   0xf   : > { %s1102_s28 = scalar_select %p927_p6, 1, 0 }
  0x10   : > { %p933_p9 = pnand %p537_p5, %p186_p7  ;;  %s198_s7 = sshll.u32 %s848_s30, 4  ;;  %s199_s7 = int_to_ptr.vmem [resolvable:$true] %s198_s7 }
  0x11   : > { %s849_s9 = smov [#allocation8]   ;;  %s850_s11 = smov [#allocation9]  }
  0x12   : > { %s1103_s29 = scalar_select %p933_p9, 1, 0 }
  0x13   : > { %p603_p10 = pneg %p933_p9  ;;  %s215_s10 = sshll.u32 %s849_s9, 4  ;;  %s216_s10 = int_to_ptr.vmem [resolvable:$true] %s215_s10 }
  0x14   : > { %s226_s12 = sshll.u32 %s850_s11, 4  ;;  %s679_s13 = scalar_lea.vmem %s199_s7, 1024  ;;  %s227_s12 = int_to_ptr.vmem [resolvable:$true] %s226_s12 }
  0x15   : > { %p941_p11 = pnand %p603_p10, %p1096_p1  ;;  %p680_p13 = scmp.ne.s32.totalorder %s199_s7, %s679_s13 }
  0x16   : > { %p687_p5 = scmp.lt.s32.totalorder %s199_s7, %s199_s7  ;;  %p688_p7 = scmp.lt.s32.totalorder %s679_s13, %s679_s13 }
  0x17   : > { %p670_p12 = pneg %p941_p11 }
  0x18   : > { %p689_p10 = por %p688_p7, %p687_p5 }
  0x19   : > { %p682_p0 = pnand %p680_p13, %p670_p12 }
  0x1b   : > { %p683_p3 = pneg %p682_p0 }
  0x1d   : > { %p690_p8 = pnand %p689_p10, %p683_p3 }
  0x1f   : > { %693 = shalt.err (!%p690_p8)
}
  0x20   : > { %s851_s14 = smov 128   ;;  %s852_s15 = smov 8  }
  0x21   : > { %s1105_s1 = sld [smem:[#allocation16_spill]]  ;;  %s705_s18 = scalar_lea.vmem %s216_s10, 16 }
  0x22   : > { %p706_p1 = scmp.ne.s32.totalorder %s216_s10, %s705_s18  ;;  %s712_s19 = scalar_lea.vmem %s216_s10, 32 }
  0x23   : > { %p713_p2 = scmp.lt.s32.totalorder %s216_s10, %s216_s10  ;;  %p714_p5 = scmp.lt.s32.totalorder %s712_s19, %s705_s18 }
  0x24   : > { %p708_p13 = pnand %p706_p1, %p670_p12 }
  0x25   : > { %p715_p3 = por %p714_p5, %p713_p2 }
  0x26   : > { %p709_p0 = pneg %p708_p13 }
  0x27   : > { %606 = dma.hbm_to_vmem [thread:$0]  (!%p941_p11), %s1105_s1, 1024, %s199_s7, [#allocation7], %s851_s14, %s851_s14, %s852_s15  }
  0x28   : > { %p716_p8 = pnand %p715_p3, %p709_p0 }
  0x2a   : > { %719 = shalt.err (!%p716_p8)
}
  0x2b   : > { %609 = dma.hbm_to_vmem [thread:$0]  (!%p941_p11), %s1092_s3, 16, %s216_s10, [#allocation7]  }
  0x2c   : > { %s731_s30 = scalar_lea.vmem %s227_s12, 16  ;;  %s738_s7 = scalar_lea.vmem %s227_s12, 32 }
  0x2d   : > { %p732_p7 = scmp.ne.s32.totalorder %s227_s12, %s731_s30  ;;  %p739_p13 = scmp.lt.s32.totalorder %s227_s12, %s227_s12 }
  0x2e   : > { %p740_p6 = scmp.lt.s32.totalorder %s738_s7, %s731_s30 }
  0x2f   : > { %p734_p1 = pnand %p732_p7, %p670_p12 }
  0x30   : > { %p741_p2 = por %p740_p6, %p739_p13 }
  0x31   : > { %p735_p10 = pneg %p734_p1 }
  0x33   : > { %p742_p0 = pnand %p741_p2, %p735_p10 }
  0x35   : > { %745 = shalt.err (!%p742_p0)
}
  0x36   : > { %612 = dma.hbm_to_vmem [thread:$0]  (!%p941_p11), %s1093_s4, 16, %s227_s12, [#allocation10]  }
  0x37   : > { %s972_s10 = sadd.s32 1, %s846_s24   ;;  %s31_s8 = sadd.s32 1, %s842_s23 }
  0x38   : > { %s28_s13 = ssub.s32 %s846_s24, %s972_s10  ;;  %p38_p12 = scmp.ne.s32.totalorder %s842_s23, %s838_s22 }
  0x39   : > { %p29_p6 = scmp.eq.s32.totalorder %s28_s13, 0  ;;  %p39_p5 = scmp.eq.s32.totalorder %s846_s24, 0 }
  0x3a   : > { %p624_p3 = scmp.lt.s32.totalorder %s846_s24, 8  ;;  %p1106_p7 = scmp.eq.s32.totalorder %s913_s25, 7 }
  0x3b   : > { %s982_s14 = scalar_select %p29_p6, %s842_s23, %s31_s8  }
  0x3c   : > { %p40_p8 = por %p39_p5, %p38_p12  ;;  %p986_p1 = por %p1106_p7, %p38_p12 }
  0x3d   : > { %s240_s16 = sand.u32 1, %s842_s23   ;;  %s543_s17 = sshll.u32 %s846_s24, 7 }
  0x3e   : > { %s1107_s15 = scalar_select %p986_p1, 1, 0 }
  0x3f   : > { %s542_s12 = sshll.u32 %s240_s16, 3  ;;  %s995_s20 = scalar_lea.hbm %s1089_s0, %s543_s17 }
  0x40   : > { %s244_s26 = scalar_lea.vmem [#allocation3], %s542_s12  ;;  %p997_p11 = pnand %p624_p3, %p40_p8 }
  0x41   : > { %s251_s30 = sshll.u32 %s244_s26, 4  ;;  %s241_s9 = scalar_lea.sflag [#allocation4], %s240_s16  ;;  %s252_s30 = int_to_ptr.vmem [resolvable:$true] %s251_s30 }
  0x42   : > { %s746_s11 = scalar_lea.hbm %s995_s20, 128  ;;  %p748_p13 = pneg %p997_p11 }
  0x43   : > { %p747_p10 = scmp.ne.s32.totalorder %s995_s20, %s746_s11  ;;  %s751_s17 = scalar_lea.hbm %s1089_s0, 1024 }
  0x44   : > { %p752_p6 = scmp.lt.s32.totalorder %s995_s20, %s1089_s0  ;;  %p753_p12 = scmp.lt.s32.totalorder %s751_s17, %s746_s11 }
  0x45   : > { %p749_p2 = pnand %p748_p13, %p747_p10 }
  0x46   : > { %p754_p5 = por %p753_p12, %p752_p6 }
  0x47   : > { %p750_p0 = pneg %p749_p2 }
  0x49   : > { %p755_p3 = pnand %p754_p5, %p750_p0 }
  0x4b   : > { %758 = shalt.err (!%p755_p3)
}
  0x4c   : > { %s759_s19 = scalar_lea.vmem %s252_s30, 128  ;;  %s853_s16 = smov [#allocation3]  }
  0x4d   : > { %p760_p8 = scmp.ne.s32.totalorder %s252_s30, %s759_s19  ;;  %s764_s26 = sshll.u32 %s853_s16, 4  ;;  %s765_s26 = int_to_ptr.vmem [resolvable:$false] %s764_s26 }
  0x4e   : > { %s766_s1 = scalar_lea.vmem %s765_s26, 256  ;;  %p767_p10 = scmp.lt.s32.totalorder %s252_s30, %s765_s26 }
  0x4f   : > { %p762_p7 = pnand %p760_p8, %p748_p13  ;;  %p768_p2 = scmp.lt.s32.totalorder %s766_s1, %s759_s19 }
  0x51   : > { %p763_p1 = pneg %p762_p7  ;;  %p769_p4 = por %p768_p2, %p767_p10 }
  0x53   : > { %p770_p9 = pnand %p769_p4, %p763_p1 }
  0x55   : > { %773 = shalt.err (!%p770_p9)
}
  0x56   : > { %616 = dma.hbm_to_vmem [thread:$0]  (!%p997_p11), %s995_s20, 128, %s252_s30, %s241_s9  }
  0x57   : > { %p1109_p0 = scmp.ne.s32.totalorder %s1103_s29, 0 }
  0x58   : > { %s1018_s11 = sand.u32 (!%p1109_p0), 1, %s838_s22   ;;  %p1110_p13 = scmp.ne.s32.totalorder (!%p1109_p0), %s1101_s27, 0 }
  0x59   : > { %260 = sbr.rel (%p1109_p0) target bundleno = 339 (0x153), region = 44  ;;  %s545_s13 = sshll.u32 (!%p1109_p0), %s1018_s11, 3 }
  0x5a   : > { %s263_s8 = scalar_lea.sflag (!%p1109_p0), [#allocation4], %s1018_s11  ;;  %s1022_s17 = scalar_lea.vmem (!%p1109_p0), [#allocation3], %s545_s13 }
  0x5e   : > { %817 = dma.done.wait (%p1110_p13), %s263_s8, 128  }
  0x5f   : > { %819 = vsyncadd (%p1110_p13), %s263_s8, 4294967168  ;;  %p1111_p4 = scmp.eq.s32.totalorder %s913_s25, 0 }
  0x61   : > { %821 = dma.done.wait (%p1111_p4), [#allocation7], 1040   ;;  %p1112_p9 = pmov %p1111_p4 }
  0x62   : > { %p1113_p1 = pmov %p1111_p4 }
  0x63   : > { %823 = vsyncadd (%p1112_p9), [#allocation7], 4294966256 }
  0x64   : > { %825 = dma.done.wait (%p1113_p1), [#allocation10], 16   ;;  %p1114_p11 = pmov %p1113_p1 }
  0x65   : > { %s1036_s1 = scalar_lea.vmem [#allocation11], %s545_s13  ;;  %p1115_p6 = scmp.ne.s32.totalorder %s913_s25, 0 }
  0x66   : > { %827 = vsyncadd (%p1114_p11), [#allocation10], 4294967280 }
  0x67   : > { %310 = sbr.rel (%p1115_p6) target bundleno = 110 (0x6e), region = 64 }
  0x6c   : > { %v311_v0 = vld [vmem:[%s1094_s5] sm:$0xff] }
  0x6d   : > { %312 = vst [vmem:[#allocation2] sm:$0xff] %v311_v0 }
  0x6e PF: > { %v321_v1 = vld [vmem:[#allocation6 + $0x38] sm:$0xff]  ;;  %v854_v2 = vmov 0.0   ;;  %v320_v3 = vld [vmem:[#allocation6 + $0x30] sm:$0xff]  ;;  %vm855_vm0 = vmmov 0   ;;  %v319_v4 = vld [vmem:[#allocation6 + $0x28] sm:$0xff]  ;;  %vm329_vm1 = vcmask 523264  }
  0x6f   : > { %568 = vmatprep.subr.mxu0 %v854_v2  ;;  %584 = vmatprep.mubr.msk.f32.mxu0 %vm855_vm0, %v854_v2  ;;  %v318_v5 = vld [vmem:[#allocation6 + $0x20] sm:$0xff]  ;;  %v317_v6 = vld [vmem:[#allocation6 + $0x18] sm:$0xff]  ;;  %v316_v7 = vld [vmem:[#allocation6 + $0x10] sm:$0xff]  ;;  %s556_s7 = sshll.u32 %s913_s25, 7  ;;  %s437_s9 = sshll.u32 %s1036_s1, 4  ;;  %s438_s9 = int_to_ptr.vmem [resolvable:$true] %s437_s9 }
  0x70   : > { %569 = vmatpush3.msra.mxu0 %v321_v1  ;;  %v315_v8 = vld [vmem:[#allocation6 + $0x8] sm:$0xff]  ;;  %v314_v9 = vld [vmem:[#allocation6] sm:$0xff]  ;;  %v313_v10 = vld [vmem:[%s1022_s17] sm:$0xff]  ;;  %s1052_s19 = scalar_lea.hbm %s1095_s6, %s556_s7  ;;  %s424_s16 = scalar_lea.sflag [#allocation5], %s1018_s11 }
  0x71   : > { %570 = vmatprep.subr.mxu0 %v854_v2  ;;  %v551_v11 = vld [vmem:[%s1091_s2] ss:$0 sm:$0xff]  ;;  %v553_v13 = vld [vmem:[#allocation8] ss:$0 sm:$0xff]  ;;  %v554_v15 = vld [vmem:[#allocation9] ss:$0 sm:$0xff] }
  0x72   : > { %571 = vmatpush3.msra.mxu0 %v320_v3  ;;  %s774_s26 = scalar_lea.vmem %s438_s9, 128  ;;  %p1116_p5 = scmp.ne.s32.totalorder %s1107_s15, 0 }
  0x73   : > { %572 = vmatprep.subr.mxu0 %v854_v2  ;;  %p775_p12 = scmp.ne.s32.totalorder %s438_s9, %s774_s26  ;;  %s856_s13 = smov [#allocation11]  }
  0x74   : > { %573 = vmatpush3.msra.mxu0 %v319_v4  ;;  %v403_v12 = vld [vmem:[#allocation2] sm:$0xff]  ;;  %s778_s8 = sshll.u32 %s856_s13, 4  ;;  %s779_s8 = int_to_ptr.vmem [resolvable:$false] %s778_s8 }
  0x75   : > { %574 = vmatprep.subr.mxu0 %v854_v2  ;;  %v411_v17 = vmul.f32 %v553_v13, %v403_v12  ;;  %p776_p3 = pnand %p775_p12, %p1116_p5  ;;  %s780_s25 = scalar_lea.vmem %s779_s8, 256 }
  0x76   : > { %575 = vmatpush3.msra.mxu0 %v318_v5  ;;  %p781_p7 = scmp.lt.s32.totalorder %s438_s9, %s779_s8  ;;  %p782_p10 = scmp.lt.s32.totalorder %s780_s25, %s774_s26 }
  0x77   : > { %576 = vmatprep.subr.mxu0 %v854_v2  ;;  %p777_p8 = pneg %p776_p3 }
  0x78   : > { %577 = vmatpush3.msra.mxu0 %v317_v6  ;;  %p783_p2 = por %p782_p10, %p781_p7 }
  0x79   : > { %578 = vmatprep.subr.mxu0 %v854_v2 }
  0x7a   : > { %579 = vmatpush3.msra.mxu0 %v316_v7  ;;  %p784_p0 = pnand %p783_p2, %p777_p8 }
  0x7b   : > { %580 = vmatprep.subr.mxu0 %v854_v2 }
  0x7c   : > { %581 = vmatpush3.msra.mxu0 %v315_v8 }
  0x7d   : > { %582 = vmatprep.subr.mxu0 %v854_v2 }
  0x7e   : > { %583 = vmatpush3.msra.mxu0 %v314_v9 }
  0x7f   : > { %585 = vmatmul.mubr.msk.f32.vlgmr.msra.gmra.mxu0 %vm329_vm1, %v313_v10 }
 0x13f   : > { %v399_v14 = vpop.f32.mrf.mxu0 }
 0x140   : > { %v400_v16 = vadd.f32 %v551_v11, %v399_v14 }
 0x141   : > { %v586_v18 = vpop.f32.mrf.mxu0 }
 0x142   : > { %v419_v19 = vmul.f32 %v554_v15, %v400_v16 }
 0x144   : > { %v420_v20 = vadd.f32 %v419_v19, %v411_v17 }
 0x146   : > { %421 = vst [vmem:[#allocation2] sm:$0xff] %v420_v20  ;;  %422 = vst [vmem:[%s1036_s1] sm:$0xff] %v420_v20 }
 0x147   : > { %787 = shalt.err (!%p784_p0)
}
 0x148   : > { %s788_s17 = scalar_lea.hbm %s1052_s19, 128  ;;  %s792_s29 = scalar_lea.hbm %s1095_s6, 1024 }
 0x149   : > { %p789_p13 = scmp.ne.s32.totalorder %s1052_s19, %s788_s17  ;;  %p793_p1 = scmp.lt.s32.totalorder %s1052_s19, %s1095_s6 }
 0x14a   : > { %p794_p11 = scmp.lt.s32.totalorder %s792_s29, %s788_s17 }
 0x14b   : > { %p790_p4 = pnand %p789_p13, %p1116_p5 }
 0x14c   : > { %p795_p6 = por %p794_p11, %p793_p1 }
 0x14d   : > { %p791_p9 = pneg %p790_p4 }
 0x14f   : > { %p796_p12 = pnand %p795_p6, %p791_p9 }
 0x151   : > { %799 = shalt.err (!%p796_p12)
}
 0x152   : > { %601 = dma.vmem_to_hbm [thread:$0]  (%p1116_p5), %s438_s9, 128, %s1052_s19, %s424_s16  }
 0x153 PF: > { %p628_p3 = scmp.ge.s32.totalorder %s846_s24, 2  ;;  %s449_s30 = sand.u32 1, %s834_s21  }
 0x154   : > { %p1117_p8 = scmp.ne.s32.totalorder %s1102_s28, 0  ;;  %s450_s7 = scalar_lea.sflag [#allocation5], %s449_s30 }
 0x156   : > { %p618_p7 = pnand %p628_p3, %p1117_p8 }
 0x158   : > { %p619_p10 = pneg %p618_p7 }
 0x15a   : > { %829 = dma.done.wait (%p619_p10), %s450_s7, 128  }
 0x15b   : > { %831 = vsyncadd (%p619_p10), %s450_s7, 4294967168  ;;  %p21_p2 = scmp.ge.s32.totalorder %s972_s10, 10   ;;  %s1118_s21 = smov %s838_s22 }
 0x15c   : > { %s1119_s22 = smov %s842_s23  ;;  %s1120_s23 = smov %s982_s14 }
 0x15d   : > { %s1121_s24 = smov %s972_s10  ;;  %23 = sbr.rel (!%p21_p2) target bundleno = 9 (0x9), region = 105 }
 0x162   :  { %455 = vsyncpa [#allocation4], 1 }
 0x163   :  { %457 = vsyncpa [#allocation4 + $0x1], 1 }
 0x164   :  { %458 = vsyncpa [#allocation7], 1 }
 0x165   :  { %459 = vsyncpa [#allocation10], 1 }
 0x166   :  { %460 = vsyncpa [#allocation5], 1 }
 0x167   :  { %462 = vsyncpa [#allocation5 + $0x1], 1 }

</bundles_post_ra>
